<compile_context>
chip_gen: v7x
topology: tpu7x:2x2x1
jax: 0.10.0
libtpu: 0.0.40
codegen_flags: <defaults>
</compile_context>

<pallas_src>
import jax
import jax.numpy as jnp
from jax.experimental import pallas as pl
from jax.experimental.pallas import tpu as pltpu

K_IN = 300        # original input feature dim
K_PAD = 384       # padded contraction dim (multiple of 128 lanes)
N_H = 128         # hidden width
N_OUT = 4         # logits
N_OUT_PAD = 128   # lane-dense padded output width


def mlp_kernel(x_ref, w1_ref, b1_ref, w2_ref, b2_ref, w3_ref, b3_ref, o_ref):
    # layer 1: (T,384)bf16 @ (384,128)bf16 -> f32 acc; bias + ReLU in f32
    h1 = jnp.dot(x_ref[...], w1_ref[...], preferred_element_type=jnp.float32)
    h1 = jnp.maximum(h1 + b1_ref[...], 0.0)
    # layer 2: (T,128) @ (128,128)
    h2 = jnp.dot(h1.astype(jnp.bfloat16), w2_ref[...],
                 preferred_element_type=jnp.float32)
    h2 = jnp.maximum(h2 + b2_ref[...], 0.0)
    # layer 3: (T,128) @ (128,128)  (cols >= 4 are zero-padded weights)
    out = jnp.dot(h2.astype(jnp.bfloat16), w3_ref[...],
                  preferred_element_type=jnp.float32)
    o_ref[...] = (out + b3_ref[...]).astype(o_ref.dtype)


def mlp_forward(x, w1, b1, w2, b2, w3, b3, *, tile_b=128):
    """x: (B, 300) f32. Weights stored (in, out) f32. Returns (B, 4) f32."""
    B, K = x.shape
    assert K == K_IN

    # --- host-side layout plumbing: batch/lane padding + bf16 cast ---
    b_pad = pl.cdiv(B, tile_b) * tile_b
    x_p = jnp.pad(x, ((0, b_pad - B), (0, K_PAD - K))).astype(jnp.bfloat16)
    w1_p = jnp.pad(w1, ((0, K_PAD - K), (0, 0))).astype(jnp.bfloat16)
    w2_p = w2.astype(jnp.bfloat16)
    w3_p = jnp.pad(w3, ((0, 0), (0, N_OUT_PAD - N_OUT))).astype(jnp.bfloat16)
    b1_p = b1.reshape(1, N_H).astype(jnp.float32)
    b2_p = b2.reshape(1, N_H).astype(jnp.float32)
    b3_p = jnp.pad(b3.reshape(1, N_OUT),
                   ((0, 0), (0, N_OUT_PAD - N_OUT))).astype(jnp.float32)

    nb = b_pad // tile_b
    pinned = lambda shape: pl.BlockSpec(shape, lambda i: (0, 0))

    out_padded = pl.pallas_call(
        mlp_kernel,
        out_shape=jax.ShapeDtypeStruct((b_pad, N_OUT_PAD), jnp.float32),
        grid_spec=pltpu.PrefetchScalarGridSpec(
            num_scalar_prefetch=0,
            grid=(nb,),
            in_specs=[
                pl.BlockSpec((tile_b, K_PAD), lambda i: (i, 0)),   # x: batch-tiled
                pinned((K_PAD, N_H)), pinned((1, N_H)),            # w1, b1 (resident)
                pinned((N_H, N_H)), pinned((1, N_H)),              # w2, b2 (resident)
                pinned((N_H, N_OUT_PAD)), pinned((1, N_OUT_PAD)),  # w3, b3 (resident)
            ],
            out_specs=pl.BlockSpec((tile_b, N_OUT_PAD), lambda i: (i, 0)),
        ),
        compiler_params=pltpu.CompilerParams(
            dimension_semantics=("parallel",),  # v7x dual-TC sharding
        ),
    )(x_p, w1_p, b1_p, w2_p, b2_p, w3_p, b3_p)

    return out_padded[:B, :N_OUT]


def xavier_normal(key, fan_in, fan_out):
    # matches torch.nn.init.xavier_normal_: std = sqrt(2 / (fan_in + fan_out))
    std = (2.0 / (fan_in + fan_out)) ** 0.5
    # stored (in, out) so the kernel computes x @ W
    return std * jax.random.normal(key, (fan_in, fan_out), dtype=jnp.float32)


def linear_bias(key, fan_in, fan_out):
    # PyTorch nn.Linear default bias init: U(-1/sqrt(fan_in), 1/sqrt(fan_in))
    bound = 1.0 / (fan_in ** 0.5)
    return jax.random.uniform(key, (1, fan_out), jnp.float32, -bound, bound)


def _ref_forward(x, w1, b1, w2, b2, w3, b3):
    # Reference that mirrors the kernel's bf16 input rounding (f32 accumulation).
    r = lambda a: a.astype(jnp.bfloat16).astype(jnp.float32)
    h1 = jnp.maximum(r(x) @ r(w1) + b1, 0.0)
    h2 = jnp.maximum(r(h1) @ r(w2) + b2, 0.0)
    return r(h2) @ r(w3) + b3


if __name__ == "__main__":
    key = jax.random.PRNGKey(0)
    k_x, k_w1, k_b1, k_w2, k_b2, k_w3, k_b3 = jax.random.split(key, 7)

    B = 32  # small demo batch; tile_b=16 -> 2 grid steps exercise the pipeline
    x = jax.random.normal(k_x, (B, 300), dtype=jnp.float32)

    w1 = xavier_normal(k_w1, 300, 128)
    b1 = linear_bias(k_b1, 300, 128)
    w2 = xavier_normal(k_w2, 128, 128)
    b2 = linear_bias(k_b2, 128, 128)
    w3 = xavier_normal(k_w3, 128, 4)
    b3 = linear_bias(k_b3, 128, 4)

    out = mlp_forward(x, w1, b1, w2, b2, w3, b3, tile_b=16)
    out = jax.block_until_ready(out)

    ref = _ref_forward(x, w1, b1, w2, b2, w3, b3)
    assert out.shape == (B, 4)
    assert jnp.allclose(out, ref, atol=2e-3, rtol=2e-3)

    print("KERNEL_OK")
</pallas_src>

<mosaic_0001>
module attributes {stable_mosaic.version = 11 : i64} {
  func.func @mlp_kernel(%arg0: i32, %arg1: memref<16x384xbf16, #tpu.memory_space<vmem>>, %arg2: memref<384x128xbf16, #tpu.memory_space<vmem>>, %arg3: memref<1x128xf32, #tpu.memory_space<vmem>>, %arg4: memref<128x128xbf16, #tpu.memory_space<vmem>>, %arg5: memref<1x128xf32, #tpu.memory_space<vmem>>, %arg6: memref<128x128xbf16, #tpu.memory_space<vmem>>, %arg7: memref<1x128xf32, #tpu.memory_space<vmem>>, %arg8: memref<16x128xf32, #tpu.memory_space<vmem>>) attributes {dimension_semantics = [#tpu.dimension_semantics<parallel>], iteration_bounds = array<i64: 2>, scalar_prefetch = 0 : i64, scratch_operands = 0 : i64, tpu.core_type = #tpu.core_type<tc>, window_params = [{transform_indices = @transform_0, window_bounds = array<i64: 16, 384>}, {pipeline_mode = #tpu.pipeline_mode<synchronous>, transform_indices = @transform_1, window_bounds = array<i64: 384, 128>}, {pipeline_mode = #tpu.pipeline_mode<synchronous>, transform_indices = @transform_2, window_bounds = array<i64: 1, 128>}, {pipeline_mode = #tpu.pipeline_mode<synchronous>, transform_indices = @transform_3, window_bounds = array<i64: 128, 128>}, {pipeline_mode = #tpu.pipeline_mode<synchronous>, transform_indices = @transform_4, window_bounds = array<i64: 1, 128>}, {pipeline_mode = #tpu.pipeline_mode<synchronous>, transform_indices = @transform_5, window_bounds = array<i64: 128, 128>}, {pipeline_mode = #tpu.pipeline_mode<synchronous>, transform_indices = @transform_6, window_bounds = array<i64: 1, 128>}, {transform_indices = @transform_7, window_bounds = array<i64: 16, 128>}]} {
    %c0 = arith.constant 0 : index
    %c0_0 = arith.constant 0 : index
    %0 = vector.load %arg1[%c0, %c0_0] : memref<16x384xbf16, #tpu.memory_space<vmem>>, vector<16x384xbf16>
    %c0_1 = arith.constant 0 : index
    %c0_2 = arith.constant 0 : index
    %1 = vector.load %arg2[%c0_1, %c0_2] : memref<384x128xbf16, #tpu.memory_space<vmem>>, vector<384x128xbf16>
    %cst = arith.constant dense<0.000000e+00> : vector<16x128xf32>
    %2 = tpu.matmul %0, %1, %cst {dimension_numbers = #tpu.dot_dimension_numbers<[1], [0], [0], [1], [0, 0, 1, 1], [], []>} : vector<16x384xbf16>, vector<384x128xbf16>, vector<16x128xf32> -> vector<16x128xf32>
    %c0_3 = arith.constant 0 : index
    %c0_4 = arith.constant 0 : index
    %3 = vector.load %arg3[%c0_3, %c0_4] : memref<1x128xf32, #tpu.memory_space<vmem>>, vector<1x128xf32>
    %4 = vector.broadcast %3 : vector<1x128xf32> to vector<16x128xf32>
    %5 = arith.addf %2, %4 : vector<16x128xf32>
    %cst_5 = arith.constant 0.000000e+00 : f32
    %6 = vector.broadcast %cst_5 : f32 to vector<16x128xf32>
    %7 = arith.maximumf %5, %6 : vector<16x128xf32>
    %8 = arith.truncf %7 : vector<16x128xf32> to vector<16x128xbf16>
    %c0_6 = arith.constant 0 : index
    %c0_7 = arith.constant 0 : index
    %9 = vector.load %arg4[%c0_6, %c0_7] : memref<128x128xbf16, #tpu.memory_space<vmem>>, vector<128x128xbf16>
    %cst_8 = arith.constant dense<0.000000e+00> : vector<16x128xf32>
    %10 = tpu.matmul %8, %9, %cst_8 {dimension_numbers = #tpu.dot_dimension_numbers<[1], [0], [0], [1], [0, 0, 1, 1], [], []>} : vector<16x128xbf16>, vector<128x128xbf16>, vector<16x128xf32> -> vector<16x128xf32>
    %c0_9 = arith.constant 0 : index
    %c0_10 = arith.constant 0 : index
    %11 = vector.load %arg5[%c0_9, %c0_10] : memref<1x128xf32, #tpu.memory_space<vmem>>, vector<1x128xf32>
    %12 = vector.broadcast %11 : vector<1x128xf32> to vector<16x128xf32>
    %13 = arith.addf %10, %12 : vector<16x128xf32>
    %cst_11 = arith.constant 0.000000e+00 : f32
    %14 = vector.broadcast %cst_11 : f32 to vector<16x128xf32>
    %15 = arith.maximumf %13, %14 : vector<16x128xf32>
    %16 = arith.truncf %15 : vector<16x128xf32> to vector<16x128xbf16>
    %c0_12 = arith.constant 0 : index
    %c0_13 = arith.constant 0 : index
    %17 = vector.load %arg6[%c0_12, %c0_13] : memref<128x128xbf16, #tpu.memory_space<vmem>>, vector<128x128xbf16>
    %cst_14 = arith.constant dense<0.000000e+00> : vector<16x128xf32>
    %18 = tpu.matmul %16, %17, %cst_14 {dimension_numbers = #tpu.dot_dimension_numbers<[1], [0], [0], [1], [0, 0, 1, 1], [], []>} : vector<16x128xbf16>, vector<128x128xbf16>, vector<16x128xf32> -> vector<16x128xf32>
    %c0_15 = arith.constant 0 : index
    %c0_16 = arith.constant 0 : index
    %19 = vector.load %arg7[%c0_15, %c0_16] : memref<1x128xf32, #tpu.memory_space<vmem>>, vector<1x128xf32>
    %20 = vector.broadcast %19 : vector<1x128xf32> to vector<16x128xf32>
    %21 = arith.addf %18, %20 : vector<16x128xf32>
    %c0_17 = arith.constant 0 : index
    %c0_18 = arith.constant 0 : index
    %22 = vector.load %arg8[%c0_17, %c0_18] : memref<16x128xf32, #tpu.memory_space<vmem>>, vector<16x128xf32>
    tpu.vector_store %arg8[%c0_17, %c0_18], %21 {strides = array<i32>} : memref<16x128xf32, #tpu.memory_space<vmem>>, vector<16x128xf32>,
    return
  }
  func.func @transform_0(%arg0: i32) -> (i32, i32) {
    %c0_i32 = arith.constant 0 : i32
    %c0_i32_0 = arith.constant 0 : i32
    return %arg0, %c0_i32 : i32, i32
  }
  func.func @transform_1(%arg0: i32) -> (i32, i32) {
    %c0_i32 = arith.constant 0 : i32
    %c0_i32_0 = arith.constant 0 : i32
    %c0_i32_1 = arith.constant 0 : i32
    return %c0_i32, %c0_i32_0 : i32, i32
  }
  func.func @transform_2(%arg0: i32) -> (i32, i32) {
    %c0_i32 = arith.constant 0 : i32
    %c0_i32_0 = arith.constant 0 : i32
    %c0_i32_1 = arith.constant 0 : i32
    return %c0_i32, %c0_i32_0 : i32, i32
  }
  func.func @transform_3(%arg0: i32) -> (i32, i32) {
    %c0_i32 = arith.constant 0 : i32
    %c0_i32_0 = arith.constant 0 : i32
    %c0_i32_1 = arith.constant 0 : i32
    return %c0_i32, %c0_i32_0 : i32, i32
  }
  func.func @transform_4(%arg0: i32) -> (i32, i32) {
    %c0_i32 = arith.constant 0 : i32
    %c0_i32_0 = arith.constant 0 : i32
    %c0_i32_1 = arith.constant 0 : i32
    return %c0_i32, %c0_i32_0 : i32, i32
  }
  func.func @transform_5(%arg0: i32) -> (i32, i32) {
    %c0_i32 = arith.constant 0 : i32
    %c0_i32_0 = arith.constant 0 : i32
    %c0_i32_1 = arith.constant 0 : i32
    return %c0_i32, %c0_i32_0 : i32, i32
  }
  func.func @transform_6(%arg0: i32) -> (i32, i32) {
    %c0_i32 = arith.constant 0 : i32
    %c0_i32_0 = arith.constant 0 : i32
    %c0_i32_1 = arith.constant 0 : i32
    return %c0_i32, %c0_i32_0 : i32, i32
  }
  func.func @transform_7(%arg0: i32) -> (i32, i32) {
    %c0_i32 = arith.constant 0 : i32
    %c0_i32_0 = arith.constant 0 : i32
    return %arg0, %c0_i32 : i32, i32
  }
}

</mosaic_0001>

<bundles_post_ra>
// kernel: tpu_custom_call.1
= control target key start
LH: loop header
LB: loop body
LE: loop exit
PB: predicated region body
PF: predicated region fallthrough
CT: control target
= control target key end

     0   :  { %12 = vsyncpa [#allocation3], 0  ;;  %s1857_s0 = inlined_call_operand.hbm [shape: bf16[32,384], index: 0, kind: input, shape index: {}]   ;;  %s1858_s1 = inlined_call_operand.hbm [shape: bf16[384,128], index: 1, kind: input, shape index: {}]   ;;  %s1859_s2 = inlined_call_operand.vmem [shape: f32[1,128], index: 2, kind: input, shape index: {}]   ;;  %s1860_s3 = inlined_call_operand.hbm [shape: bf16[128,128], index: 3, kind: input, shape index: {}]   ;;  %s1861_s4 = inlined_call_operand.vmem [shape: f32[1,128], index: 4, kind: input, shape index: {}]   ;;  %s1862_s5 = inlined_call_operand.hbm [shape: bf16[128,128], index: 5, kind: input, shape index: {}]   ;;  %s1863_s6 = inlined_call_operand.vmem [shape: f32[1,128], index: 6, kind: input, shape index: {}]   ;;  %s1864_s7 = inlined_call_operand.hbm [shape: f32[32,128], index: 7, kind: output, shape index: {}]  }
   0x1   :  { %14 = vsyncpa [#allocation3 + $0x1], 0 }
   0x2   :  { %15 = vsyncpa [#allocation6], 0 }
   0x3   :  { %16 = vsyncpa [#allocation9], 0 }
   0x4   :  { %17 = vsyncpa [#allocation4], 0 }
   0x5   :  { %19 = vsyncpa [#allocation4 + $0x1], 0  ;;  %s1544_s24 = smov 0   ;;  %s1546_s25 = smov 0  }
   0x6   :  { %s1548_s26 = smov 0   ;;  %s1550_s27 = smov 0  }
   0x7 LB: > { %s1565_s28 = sadd.s32 4294967295, %s1489_s27   ;;  %s994_s29 = sadd.s32 4294967294, %s1489_s27   ;;  %s1489_s27 = sphi %s1550_s27, %s1890_s27   ;;  %s1485_s26 = sphi %s1548_s26, %s1889_s26   ;;  %s1481_s25 = sphi %s1546_s25, %s1888_s25   ;;  %s1477_s24 = sphi %s1544_s24, %s1887_s24  }
   0x8   : > { %p45_p0 = scmp.ne.s32.totalorder %s1481_s25, %s1477_s24  ;;  %p1865_p1 = scmp.eq.s32.totalorder %s1565_s28, 0 }
   0x9   : > { %p201_p3 = scmp.eq.s32.totalorder %s994_s29, 1  ;;  %p995_p5 = scmp.ge.s32.totalorder %s1489_s27, 1 }
   0xa   : > { %p1574_p4 = por %p1865_p1, %p45_p0  ;;  %p208_p7 = scmp.lt.s32.totalorder %s1489_s27, 3 }
   0xb   : > { %p1579_p6 = por %p201_p3, %p45_p0  ;;  %s1491_s10 = smov [#allocation5]  }
   0xc   : > { %s1869_s30 = scalar_select %p1574_p4, 1, 0 }
   0xd   : > { %s1870_s8 = scalar_select %p1579_p6, 1, 0 }
   0xe   : > { %p1584_p8 = pnand %p995_p5, %p208_p7  ;;  %s220_s11 = sshll.u32 %s1491_s10, 4  ;;  %s1588_s11 = int_to_ptr.vmem [resolvable:$true] %s220_s11 }
   0xf   : > { %1871 = sst [smem:[#allocation15_spill]] %s1870_s8  ;;  %s1492_s13 = smov [#allocation7]  }
  0x10   : > { %s1872_s9 = scalar_select %p1584_p8, 1, 0 }
  0x11   : > { %p1188_p9 = pneg %p1584_p8  ;;  %s236_s14 = sshll.u32 %s1492_s13, 4  ;;  %s1599_s14 = int_to_ptr.vmem [resolvable:$true] %s236_s14 }
  0x12   : > { %s1493_s15 = smov [#allocation8]   ;;  %s1301_s19 = scalar_lea.hbm %s1858_s1, 3072 }
  0x13   : > { %p1595_p11 = pnand %p1188_p9, %p1865_p1  ;;  %s1601_s16 = sshll.u32 %s1493_s15, 4  ;;  %s253_s16 = int_to_ptr.vmem [resolvable:$true] %s1601_s16 }
  0x14   : > { %p1302_p12 = scmp.ne.s32.totalorder %s1858_s1, %s1301_s19  ;;  %p1308_p5 = scmp.lt.u32.totalorder %s1301_s19, %s1858_s1 }
  0x15   : > { %p1611_p13 = pneg %p1595_p11 }
  0x17   : > { %p1304_p0 = pnand %p1611_p13, %p1302_p12 }
  0x19   : > { %p1305_p3 = pneg %p1304_p0 }
  0x1b   : > { %p1310_p7 = pnand %p1308_p5, %p1305_p3 }
  0x1d   : > { %1313 = shalt.err (!%p1310_p7)
}
  0x1e   : > { %s1314_s10 = scalar_lea.vmem %s1588_s11, 3072  ;;  %p1322_p2 = scmp.lt.s32.totalorder %s1588_s11, %s1588_s11 }
  0x1f   : > { %p1315_p9 = scmp.ne.s32.totalorder %s1588_s11, %s1314_s10  ;;  %p1323_p6 = scmp.lt.s32.totalorder %s1314_s10, %s1314_s10 }
  0x21   : > { %p1317_p10 = pnand %p1315_p9, %p1611_p13  ;;  %p1324_p12 = por %p1323_p6, %p1322_p2 }
  0x23   : > { %p1318_p1 = pneg %p1317_p10 }
  0x25   : > { %p1325_p0 = pnand %p1324_p12, %p1318_p1 }
  0x27   : > { %1328 = shalt.err (!%p1325_p0)
}
  0x28   : > { %s1494_s13 = smov 64   ;;  %s1495_s15 = smov 4  }
  0x29   : > { %1191 = dma.hbm_to_vmem [thread:$0]  (!%p1595_p11), %s1858_s1, 3072, %s1588_s11, [#allocation6], %s1494_s13, %s1494_s13, %s1495_s15  }
  0x2a   : > { %s1329_s21 = scalar_lea.hbm %s1860_s3, 1024 }
  0x2b   : > { %p1330_p1 = scmp.ne.s32.totalorder %s1860_s3, %s1329_s21  ;;  %p1336_p10 = scmp.lt.u32.totalorder %s1329_s21, %s1860_s3 }
  0x2d   : > { %p1332_p2 = pnand %p1330_p1, %p1611_p13 }
  0x2f   : > { %p1333_p6 = pneg %p1332_p2 }
  0x31   : > { %p1338_p3 = pnand %p1336_p10, %p1333_p6 }
  0x33   : > { %1341 = shalt.err (!%p1338_p3)
}
  0x34   : > { %s1342_s11 = scalar_lea.vmem %s1599_s14, 1024  ;;  %p1350_p12 = scmp.lt.s32.totalorder %s1599_s14, %s1599_s14 }
  0x35   : > { %p1343_p5 = scmp.ne.s32.totalorder %s1599_s14, %s1342_s11  ;;  %p1351_p0 = scmp.lt.s32.totalorder %s1342_s11, %s1342_s11 }
  0x37   : > { %p1345_p7 = pnand %p1343_p5, %p1611_p13  ;;  %p1352_p1 = por %p1351_p0, %p1350_p12 }
  0x39   : > { %p1346_p9 = pneg %p1345_p7 }
  0x3b   : > { %p1353_p2 = pnand %p1352_p1, %p1346_p9 }
  0x3d   : > { %1356 = shalt.err (!%p1353_p2)
}
  0x3e   : > { %1194 = dma.hbm_to_vmem [thread:$0]  (!%p1595_p11), %s1860_s3, 1024, %s1599_s14, [#allocation6], %s1494_s13, %s1494_s13, %s1495_s15  }
  0x3f   : > { %s1357_s20 = scalar_lea.hbm %s1862_s5, 1024 }
  0x40   : > { %p1358_p6 = scmp.ne.s32.totalorder %s1862_s5, %s1357_s20  ;;  %p1364_p5 = scmp.lt.u32.totalorder %s1357_s20, %s1862_s5 }
  0x42   : > { %p1360_p10 = pnand %p1358_p6, %p1611_p13 }
  0x44   : > { %p1361_p3 = pneg %p1360_p10 }
  0x46   : > { %p1366_p7 = pnand %p1364_p5, %p1361_p3 }
  0x48   : > { %1369 = shalt.err (!%p1366_p7)
}
  0x49   : > { %s1370_s11 = scalar_lea.vmem %s253_s16, 1024  ;;  %p1378_p1 = scmp.lt.s32.totalorder %s253_s16, %s253_s16 }
  0x4a   : > { %p1371_p9 = scmp.ne.s32.totalorder %s253_s16, %s1370_s11  ;;  %p1379_p2 = scmp.lt.s32.totalorder %s1370_s11, %s1370_s11 }
  0x4c   : > { %p1373_p12 = pnand %p1371_p9, %p1611_p13  ;;  %p1380_p4 = por %p1379_p2, %p1378_p1 }
  0x4e   : > { %p1374_p0 = pneg %p1373_p12 }
  0x50   : > { %p1381_p8 = pnand %p1380_p4, %p1374_p0 }
  0x52   : > { %1384 = shalt.err (!%p1381_p8)
}
  0x53   : > { %1197 = dma.hbm_to_vmem [thread:$0]  (!%p1595_p11), %s1862_s5, 1024, %s253_s16, [#allocation9], %s1494_s13, %s1494_s13, %s1495_s15  }
  0x54   : > { %s1684_s22 = sadd.s32 1, %s1489_s27   ;;  %s32_s17 = sadd.s32 1, %s1485_s26 }
  0x55   : > { %s29_s12 = ssub.s32 %s1489_s27, %s1684_s22  ;;  %p39_p8 = scmp.ne.s32.totalorder %s1485_s26, %s1481_s25 }
  0x56   : > { %p30_p4 = scmp.eq.s32.totalorder %s29_s12, 0  ;;  %p40_p13 = scmp.eq.s32.totalorder %s1489_s27, 0 }
  0x57   : > { %p1209_p6 = scmp.lt.s32.totalorder %s1489_s27, 2  ;;  %p1875_p3 = scmp.eq.s32.totalorder %s1565_s28, 1 }
  0x58   : > { %s1694_s18 = scalar_select %p30_p4, %s1485_s26, %s32_s17  }
  0x59   : > { %p41_p10 = por %p40_p13, %p39_p8  ;;  %p1698_p5 = por %p1875_p3, %p39_p8 }
  0x5a   : > { %s269_s20 = sand.u32 1, %s1485_s26   ;;  %s1170_s21 = smul.u32 384, %s1489_s27 }
  0x5b   : > { %s1169_s16 = smul.u32 24, %s269_s20  ;;  %p1709_p11 = pnand %p1209_p6, %p41_p10 }
  0x5c   : > { %s1707_s23 = scalar_lea.hbm %s1857_s0, %s1170_s21  ;;  %s1715_s14 = scalar_lea.sflag [#allocation3], %s269_s20 }
  0x5d   : > { %s273_s10 = scalar_lea.vmem [#allocation2], %s1169_s16  ;;  %s1385_s8 = scalar_lea.hbm %s1707_s23, 384 }
  0x5e   : > { %s281_s11 = sshll.u32 %s273_s10, 4  ;;  %p1386_p7 = scmp.ne.s32.totalorder %s1707_s23, %s1385_s8  ;;  %s1713_s11 = int_to_ptr.vmem [resolvable:$true] %s281_s11 }
  0x5f   : > { %p1387_p9 = pneg %p1709_p11  ;;  %s1390_s21 = scalar_lea.hbm %s1857_s0, 768 }
  0x60   : > { %p1391_p1 = scmp.lt.u32.totalorder %s1707_s23, %s1857_s0  ;;  %p1392_p2 = scmp.lt.u32.totalorder %s1390_s21, %s1385_s8 }
  0x61   : > { %p1388_p12 = pnand %p1387_p9, %p1386_p7  ;;  %p1394_p8 = scmp.lt.u32.totalorder %s1385_s8, %s1707_s23 }
  0x62   : > { %p1393_p4 = por %p1392_p2, %p1391_p1 }
  0x63   : > { %p1389_p0 = pneg %p1388_p12 }
  0x64   : > { %p1395_p13 = por %p1394_p8, %p1393_p4 }
  0x66   : > { %p1396_p6 = pnand %p1395_p13, %p1389_p0 }
  0x68   : > { %1399 = shalt.err (!%p1396_p6)
}
  0x69   : > { %s1400_s20 = scalar_lea.vmem %s1713_s11, 384  ;;  %s1496_s16 = smov [#allocation2]  }
  0x6a   : > { %p1401_p10 = scmp.ne.s32.totalorder %s1713_s11, %s1400_s20  ;;  %s1405_s10 = sshll.u32 %s1496_s16, 4  ;;  %s1406_s10 = int_to_ptr.vmem [resolvable:$false] %s1405_s10 }
  0x6b   : > { %s1407_s12 = scalar_lea.vmem %s1406_s10, 768  ;;  %p1408_p12 = scmp.lt.s32.totalorder %s1713_s11, %s1406_s10 }
  0x6c   : > { %p1403_p3 = pnand %p1401_p10, %p1387_p9  ;;  %p1409_p1 = scmp.lt.s32.totalorder %s1407_s12, %s1400_s20 }
  0x6e   : > { %p1404_p7 = pneg %p1403_p3  ;;  %p1410_p2 = por %p1409_p1, %p1408_p12 }
  0x70   : > { %p1411_p4 = pnand %p1410_p2, %p1404_p7 }
  0x72   : > { %1414 = shalt.err (!%p1411_p4)
}
  0x73   : > { %s1497_s8 = smov 192   ;;  %s1498_s17 = smov 12  }
  0x74   : > { %1201 = dma.hbm_to_vmem [thread:$0]  (!%p1709_p11), %s1707_s23, 384, %s1713_s11, %s1715_s14, %s1497_s8, %s1497_s8, %s1498_s17  }
  0x75   : > { %p1878_p9 = scmp.ne.s32.totalorder %s1872_s9, 0 }
  0x76   : > { %s1746_s21 = sand.u32 (!%p1878_p9), 1, %s1481_s25   ;;  %p1879_p0 = scmp.ne.s32.totalorder (!%p1878_p9), %s1869_s30, 0 }
  0x77   : > { %293 = sbr.rel (%p1878_p9) target bundleno = 844 (0x34c), region = 48  ;;  %s296_s15 = scalar_lea.sflag (!%p1878_p9), [#allocation3], %s1746_s21 }
  0x78   : > { %s1171_s13 = smul.u32 (!%p1878_p9), 24, %s1746_s21 }
  0x7a   : > { %s1750_s20 = scalar_lea.vmem (!%p1878_p9), [#allocation2], %s1171_s13 }
  0x7e   : > { %1460 = dma.done.wait (%p1879_p0), %s296_s15, 384  }
  0x7f   : > { %1462 = vsyncadd (%p1879_p0), %s296_s15, 4294966912  ;;  %p1880_p11 = scmp.eq.s32.totalorder %s1565_s28, 0 }
  0x81   : > { %1464 = dma.done.wait (%p1880_p11), [#allocation6], 4096   ;;  %p1881_p8 = pmov %p1880_p11 }
  0x83   : > { %1466 = vsyncadd (%p1881_p8), [#allocation6], 4294963200  ;;  %p1882_p13 = pmov %p1881_p8 }
  0x84   : > { %p1883_p6 = pmov %p1881_p8 }
  0x85   : > { %1468 = dma.done.wait (%p1882_p13), [#allocation9], 1024  }
  0x86   : > { %1470 = vsyncadd (%p1883_p6), [#allocation9], 4294966272  ;;  %v1499_v0 = vmov 0.0   ;;  %vm1500_vm0 = vmmov 0   ;;  %v1257_v1 = vld [vmem:[#allocation5 + $0x40] sm:$0xff]   ;;  %v1260_v4 = vld [vmem:[#allocation5 + $0x48] sm:$0xff]  }
  0x87   : > { %1109 = vmatprep.subr.bf16.mxu1 %v1499_v0  ;;  %1125 = vmatprep.mubr.msk.bf16.mxu1 %vm1500_vm0, %v1499_v0  ;;  %v1258_v2 = vld [vmem:[#allocation5] sm:$0xff]   ;;  %v1261_v5 = vld [vmem:[#allocation5 + $0x8] sm:$0xff]   ;;  %v1263_v7 = vld [vmem:[#allocation5 + $0x50] sm:$0xff]   ;;  %s1007_s11 = sshll.u32 %s1746_s21, 4  ;;  %s1059_s8 = sshll.u32 %s1565_s28, 8 }
  0x88   : > { %1060 = vmatprep.subr.bf16.mxu0 %v1257_v1  ;;  %v1259_v3 = vld [vmem:[#allocation5 + $0x80] sm:$0xff]   ;;  %v1262_v6 = vld [vmem:[#allocation5 + $0x88] sm:$0xff]   ;;  %v1264_v8 = vld [vmem:[#allocation5 + $0x10] sm:$0xff]   ;;  %s341_s10 = scalar_lea.vmem [#allocation10], %s1007_s11  ;;  %s1813_s15 = scalar_lea.hbm %s1864_s7, %s1059_s8 }
  0x89   : > { %1061 = vmatpush3.bf16.msra.mxu0 %v1258_v2  ;;  %1110 = vmatpush3.bf16.msra.mxu1 %v1259_v3  ;;  %v1265_v9 = vld [vmem:[#allocation5 + $0x90] sm:$0xff]   ;;  %v1266_v10 = vld [vmem:[#allocation5 + $0x58] sm:$0xff]   ;;  %v1269_v13 = vld [vmem:[#allocation5 + $0x60] sm:$0xff]   ;;  %s892_s12 = sshll.u32 %s341_s10, 4  ;;  %s1501_s30 = smov [#allocation10]   ;;  %s1808_s12 = int_to_ptr.vmem [resolvable:$true] %s892_s12 }
  0x8a   : > { %1062 = vmatprep.subr.bf16.mxu0 %v1260_v4  ;;  %1111 = vmatprep.subr.bf16.mxu1 %v1499_v0  ;;  %v1267_v11 = vld [vmem:[#allocation5 + $0x18] sm:$0xff]   ;;  %v1270_v14 = vld [vmem:[#allocation5 + $0x20] sm:$0xff]   ;;  %v1272_v16 = vld [vmem:[#allocation5 + $0x68] sm:$0xff]   ;;  %s1415_s28 = scalar_lea.vmem %s1808_s12, 256  ;;  %s1419_s9 = sshll.u32 %s1501_s30, 4  ;;  %s1420_s9 = int_to_ptr.vmem [resolvable:$false] %s1419_s9 }
  0x8b   : > { %v1268_v12 = vld [vmem:[#allocation5 + $0x98] sm:$0xff]   ;;  %v1271_v15 = vld [vmem:[#allocation5 + $0xa0] sm:$0xff]   ;;  %v1273_v17 = vld [vmem:[#allocation5 + $0x28] sm:$0xff]   ;;  %p1416_p10 = scmp.ne.s32.totalorder %s1808_s12, %s1415_s28  ;;  %s1421_s23 = scalar_lea.vmem %s1420_s9, 512 }
  0x8c   : > { %v1274_v18 = vld [vmem:[#allocation5 + $0xa8] sm:$0xff]   ;;  %v1275_v19 = vld [vmem:[#allocation5 + $0x70] sm:$0xff]   ;;  %v1278_v22 = vld [vmem:[#allocation5 + $0x78] sm:$0xff]   ;;  %p1422_p12 = scmp.lt.s32.totalorder %s1808_s12, %s1420_s9  ;;  %p1423_p1 = scmp.lt.s32.totalorder %s1421_s23, %s1415_s28 }
  0x8d   : > { %1063 = vmatpush3.bf16.msra.mxu0 %v1261_v5  ;;  %1112 = vmatpush3.bf16.msra.mxu1 %v1262_v6  ;;  %v1276_v20 = vld [vmem:[#allocation5 + $0x30] sm:$0xff]   ;;  %v1279_v24 = vld [vmem:[#allocation5 + $0x38] sm:$0xff]   ;;  %v1285_v28 = vld [vmem:[#allocation7] sm:$0xff]   ;;  %p1417_p3 = pnand %p1416_p10, %p1698_p5 }
  0x8e   : > { %1064 = vmatprep.subr.bf16.mxu0 %v1263_v7  ;;  %1113 = vmatprep.subr.bf16.mxu1 %v1499_v0  ;;  %v1277_v21 = vld [vmem:[#allocation5 + $0xb0] sm:$0xff]   ;;  %v1283_v25 = vld [vmem:[#allocation5 + $0xb8] sm:$0xff]   ;;  %v1286_v29 = vld [vmem:[#allocation7 + $0x8] sm:$0xff]   ;;  %p1424_p2 = por %p1423_p1, %p1422_p12 }
  0x8f   : > { %v1282_v23 = vld [vmem:[%s1750_s20 + $0x4] ss:$12 sps:$4 sm:$0xff]   ;;  %v1280_v26 = vld [vmem:[%s1750_s20] ss:$12 sps:$4 sm:$0xff]   ;;  %v1284_v27 = vld [vmem:[%s1750_s20 + $0x8] ss:$12 sps:$4 sm:$0xff]   ;;  %p1418_p7 = pneg %p1417_p3 }
  0x90   : > { %596 = vmatprep.mubr.bf16.mxu0 %v1282_v23  ;;  %v1287_v30 = vld [vmem:[#allocation7 + $0x10] sm:$0xff]   ;;  %v1288_v31 = vld [vmem:[#allocation7 + $0x18] sm:$0xff]   ;;  %v1289_v32 = vld [vmem:[#allocation7 + $0x20] sm:$0xff]   ;;  %s879_s20 = scalar_lea.sflag [#allocation4], %s1746_s21 }
  0x91   : > { %1065 = vmatpush3.bf16.msra.mxu0 %v1264_v8  ;;  %1114 = vmatpush3.bf16.msra.mxu1 %v1265_v9  ;;  %v1290_v33 = vld [vmem:[#allocation7 + $0x28] sm:$0xff]   ;;  %v1291_v34 = vld [vmem:[#allocation7 + $0x30] sm:$0xff]   ;;  %v1292_v35 = vld [vmem:[#allocation7 + $0x38] sm:$0xff]   ;;  %p1425_p4 = pnand %p1424_p2, %p1418_p7 }
  0x92   : > { %1066 = vmatprep.subr.bf16.mxu0 %v1266_v10  ;;  %1115 = vmatprep.subr.bf16.mxu1 %v1499_v0  ;;  %v1293_v36 = vld [vmem:[#allocation8] sm:$0xff]   ;;  %v1294_v37 = vld [vmem:[#allocation8 + $0x8] sm:$0xff]   ;;  %v1295_v38 = vld [vmem:[#allocation8 + $0x10] sm:$0xff]  }
  0x93   : > { %v1296_v39 = vld [vmem:[#allocation8 + $0x18] sm:$0xff]   ;;  %v1297_v40 = vld [vmem:[#allocation8 + $0x20] sm:$0xff]   ;;  %v1298_v41 = vld [vmem:[#allocation8 + $0x28] sm:$0xff]  }
  0x94   : > { %v1008_v44 = vld [vmem:[%s1859_s2] ss:$0 sm:$0xff]  ;;  %v1300_v61 = vld [vmem:[#allocation8 + $0x38] sm:$0xff]  }
  0x95   : > { %1067 = vmatpush3.bf16.msra.mxu0 %v1267_v11  ;;  %1116 = vmatpush3.bf16.msra.mxu1 %v1268_v12  ;;  %v1299_v60 = vld [vmem:[#allocation8 + $0x30] sm:$0xff]  }
  0x96   : > { %1068 = vmatprep.subr.bf16.mxu0 %v1269_v13  ;;  %1117 = vmatprep.subr.bf16.mxu1 %v1499_v0  ;;  %v1036_v62 = vld [vmem:[%s1861_s4] ss:$0 sm:$0xff] }
  0x99   : > { %1069 = vmatpush3.bf16.msra.mxu0 %v1270_v14  ;;  %1118 = vmatpush3.bf16.msra.mxu1 %v1271_v15 }
  0x9a   : > { %1070 = vmatprep.subr.bf16.mxu0 %v1272_v16  ;;  %1119 = vmatprep.subr.bf16.mxu1 %v1499_v0 }
  0x9d   : > { %1071 = vmatpush3.bf16.msra.mxu0 %v1273_v17  ;;  %1120 = vmatpush3.bf16.msra.mxu1 %v1274_v18 }
  0x9e   : > { %1072 = vmatprep.subr.bf16.mxu0 %v1275_v19  ;;  %1121 = vmatprep.subr.bf16.mxu1 %v1499_v0 }
  0xa1   : > { %1073 = vmatpush3.bf16.msra.mxu0 %v1276_v20  ;;  %1122 = vmatpush3.bf16.msra.mxu1 %v1277_v21 }
  0xa2   : > { %1074 = vmatprep.subr.bf16.mxu0 %v1278_v22  ;;  %1123 = vmatprep.subr.bf16.mxu1 %v1499_v0 }
  0xa5   : > { %1075 = vmatpush3.bf16.msra.mxu0 %v1279_v24  ;;  %1124 = vmatpush3.bf16.msra.mxu1 %v1283_v25 }
  0xa6   : > { %1129 = vmatprep.subr.bf16.mxu0 %v1499_v0  ;;  %1149 = vmatprep.subr.bf16.mxu1 %v1499_v0 }
  0xa8   : > { %597 = vmatmul.mubr.bf16.vlgmr.msra.gmra.mrb[0].mxu0 %v1280_v26  ;;  %1126 = vmatmul.mubr.bf16.vlgmr.msra.gmra.mrb[0].mxu1 %v1284_v27 }
  0xa9   : > { %1130 = vmatpush3.bf16.msra.mxu0 %v1285_v28  ;;  %1145 = vmatprep.mubr.msk.bf16.mxu0 %vm1500_vm0, %v1499_v0 }
  0xaa   : > { %1131 = vmatprep.subr.bf16.mxu0 %v1499_v0  ;;  %1165 = vmatprep.mubr.msk.bf16.mxu1 %vm1500_vm0, %v1499_v0 }
  0xab   : > { %1150 = vmatpush3.bf16.msra.mxu1 %v1293_v36 }
  0xac   : > { %1151 = vmatprep.subr.bf16.mxu1 %v1499_v0 }
  0xad   : > { %1132 = vmatpush3.bf16.msra.mxu0 %v1286_v29 }
  0xae   : > { %1133 = vmatprep.subr.bf16.mxu0 %v1499_v0 }
  0xaf   : > { %1152 = vmatpush3.bf16.msra.mxu1 %v1294_v37 }
  0xb0   : > { %1153 = vmatprep.subr.bf16.mxu1 %v1499_v0 }
  0xb1   : > { %1134 = vmatpush3.bf16.msra.mxu0 %v1287_v30 }
  0xb2   : > { %1135 = vmatprep.subr.bf16.mxu0 %v1499_v0 }
  0xb3   : > { %1154 = vmatpush3.bf16.msra.mxu1 %v1295_v38 }
  0xb4   : > { %1155 = vmatprep.subr.bf16.mxu1 %v1499_v0 }
  0xb5   : > { %1136 = vmatpush3.bf16.msra.mxu0 %v1288_v31 }
  0xb6   : > { %1137 = vmatprep.subr.bf16.mxu0 %v1499_v0 }
  0xb7   : > { %1156 = vmatpush3.bf16.msra.mxu1 %v1296_v39 }
  0xb8   : > { %1157 = vmatprep.subr.bf16.mxu1 %v1499_v0 }
  0xb9   : > { %1138 = vmatpush3.bf16.msra.mxu0 %v1289_v32 }
  0xba   : > { %1139 = vmatprep.subr.bf16.mxu0 %v1499_v0 }
  0xbb   : > { %1158 = vmatpush3.bf16.msra.mxu1 %v1297_v40 }
  0xbc   : > { %1159 = vmatprep.subr.bf16.mxu1 %v1499_v0 }
  0xbd   : > { %1140 = vmatpush3.bf16.msra.mxu0 %v1290_v33 }
  0xbe   : > { %1141 = vmatprep.subr.bf16.mxu0 %v1499_v0 }
  0xbf   : > { %1160 = vmatpush3.bf16.msra.mxu1 %v1298_v41 }
  0xc0   : > { %1161 = vmatprep.subr.bf16.mxu1 %v1499_v0 }
  0xc1   : > { %1142 = vmatpush3.bf16.msra.mxu0 %v1291_v34 }
  0xc2   : > { %1143 = vmatprep.subr.bf16.mxu0 %v1499_v0 }
  0xc3   : > { %1162 = vmatpush3.bf16.msra.mxu1 %v1299_v60 }
  0xc4   : > { %1163 = vmatprep.subr.bf16.mxu1 %v1499_v0  ;;  %v1045_v0 = vld [vmem:[%s1863_s6] ss:$0 sm:$0xff] }
  0xc5   : > { %1144 = vmatpush3.bf16.msra.mxu0 %v1292_v35 }
  0xc7   : > { %1164 = vmatpush3.bf16.msra.mxu1 %v1300_v61 }
 0x17b   : > { %v1076_v42 = vpop.f32.mrb[0].mxu0  ;;  %v639_v45 = vpop.f32.mrb[0].mxu1 }
 0x17c   : > { %v1077_v43 = vpop.f32.mrb[1].mxu0  ;;  %v1127_v48 = vpop.f32.mrb[1].mxu1 }
 0x17d   : > { %v1078_v46 = vadd.f32 %v1077_v43, %v1076_v42  ;;  %v1079_v47 = vpop.f32.mrb[2].mxu0  ;;  %v642_v50 = vpop.f32.mrb[2].mxu1 }
 0x17e   : > { %v1080_v49 = vpop.f32.mrb[3].mxu0  ;;  %v1128_v53 = vpop.f32.mrb[3].mxu1 }
 0x17f   : > { %v599_v51 = vadd.f32 %v1078_v46, %v1008_v44  ;;  %v1081_v52 = vadd.f32 %v1080_v49, %v1079_v47 }
 0x181   : > { %v640_v54 = vadd.f32 %v639_v45, %v599_v51  ;;  %v602_v55 = vadd.f32 %v1081_v52, %v1008_v44 }
 0x183   : > { %v643_v56 = vadd.f32 %v642_v50, %v602_v55  ;;  %v646_v57 = vmax.f32 %v640_v54, 0.0 }
 0x185   : > { %v647_v58 = vmax.f32 %v643_v56, 0.0 }
 0x187   : > { %v648_v59 = vpack.c.bf16 %v647_v58, %v646_v57 }
 0x189   : > { %1146 = vmatmul.mubr.bf16.vlgmr.msra.gmra.mrb[4].mxu0 %v648_v59 }
 0x25c   : > { %v754_v63 = vpop.f32.mrb[4].mxu0 }
 0x25d   : > { %v755_v1 = vadd.f32 %v1036_v62, %v754_v63  ;;  %v1147_v2 = vpop.f32.mrb[5].mxu0 }
 0x25e   : > { %v757_v3 = vpop.f32.mrb[6].mxu0 }
 0x25f   : > { %v758_v4 = vadd.f32 %v1036_v62, %v757_v3  ;;  %v1148_v5 = vpop.f32.mrb[7].mxu0  ;;  %v761_v6 = vmax.f32 %v755_v1, 0.0 }
 0x261   : > { %v762_v7 = vmax.f32 %v758_v4, 0.0 }
 0x263   : > { %v763_v8 = vpack.c.bf16 %v762_v7, %v761_v6 }
 0x265   : > { %1166 = vmatmul.mubr.bf16.vlgmr.msra.gmra.mrb[4].mxu1 %v763_v8 }
 0x338   : > { %v869_v9 = vpop.f32.mrb[4].mxu1 }
 0x339   : > { %v870_v10 = vadd.f32 %v1045_v0, %v869_v9  ;;  %v1167_v11 = vpop.f32.mrb[5].mxu1 }
 0x33a   : > { %v872_v12 = vpop.f32.mrb[6].mxu1 }
 0x33b   : > { %876 = vst [vmem:[%s341_s10] sm:$0xff] %v870_v10  ;;  %v873_v13 = vadd.f32 %v1045_v0, %v872_v12  ;;  %v1168_v14 = vpop.f32.mrb[7].mxu1 }
 0x33d   : > { %877 = vst [vmem:[%s341_s10 + $0x8] sm:$0xff] %v873_v13 }
 0x33e   : > { %1428 = shalt.err (!%p1425_p4)
}
 0x33f   : > { %s1429_s29 = scalar_lea.hbm %s1813_s15, 256  ;;  %s1433_s16 = scalar_lea.hbm %s1864_s7, 512 }
 0x340   : > { %p1430_p9 = scmp.ne.s32.totalorder %s1813_s15, %s1429_s29  ;;  %p1434_p8 = scmp.lt.u32.totalorder %s1813_s15, %s1864_s7 }
 0x341   : > { %p1435_p13 = scmp.lt.u32.totalorder %s1433_s16, %s1429_s29  ;;  %p1437_p10 = scmp.lt.u32.totalorder %s1429_s29, %s1813_s15 }
 0x342   : > { %p1431_p0 = pnand %p1430_p9, %p1698_p5 }
 0x343   : > { %p1436_p6 = por %p1435_p13, %p1434_p8 }
 0x344   : > { %p1432_p11 = pneg %p1431_p0 }
 0x345   : > { %p1438_p3 = por %p1437_p10, %p1436_p6 }
 0x347   : > { %p1439_p7 = pnand %p1438_p3, %p1432_p11 }
 0x349   : > { %1442 = shalt.err (!%p1439_p7)
}
 0x34a   : > { %s1502_s17 = smov 128   ;;  %s1503_s13 = smov 8  }
 0x34b   : > { %1186 = dma.vmem_to_hbm [thread:$0]  (%p1698_p5), %s1808_s12, 256, %s1813_s15, %s879_s20, %s1502_s17, %s1502_s17, %s1503_s13  }
 0x34c PF: > { %s1884_s28 = sld [smem:[#allocation15_spill]]  ;;  %s907_s30 = sand.u32 1, %s1477_s24  }
 0x34d   : > { %p1886_p1 = scmp.ge.s32.totalorder %s1489_s27, 2  ;;  %s908_s9 = scalar_lea.sflag [#allocation4], %s907_s30 }
 0x352   : > { %p1885_p12 = scmp.ne.s32.totalorder %s1884_s28, 0 }
 0x354   : > { %p1203_p2 = pnand %p1886_p1, %p1885_p12 }
 0x356   : > { %1472 = dma.done.wait (!%p1203_p2), %s908_s9, 256  }
 0x357   : > { %1474 = vsyncadd (!%p1203_p2), %s908_s9, 4294967040  ;;  %p22_p4 = scmp.ge.s32.totalorder %s1684_s22, 4   ;;  %s1887_s24 = smov %s1481_s25 }
 0x358   : > { %s1888_s25 = smov %s1485_s26  ;;  %s1889_s26 = smov %s1694_s18 }
 0x359   : > { %s1890_s27 = smov %s1684_s22  ;;  %24 = sbr.rel (!%p22_p4) target bundleno = 7 (0x7), region = 105 }
 0x360   :  { %913 = vsyncpa [#allocation3], 1 }
 0x361   :  { %915 = vsyncpa [#allocation3 + $0x1], 1 }
 0x362   :  { %916 = vsyncpa [#allocation6], 1 }
 0x363   :  { %917 = vsyncpa [#allocation9], 1 }
 0x364   :  { %918 = vsyncpa [#allocation4], 1 }
 0x365   :  { %920 = vsyncpa [#allocation4 + $0x1], 1 }

</bundles_post_ra>
